<compile_context>
chip_gen: v6e
topology: v6e:2x2x1
jax: 0.10.0
libtpu: 0.0.40
codegen_flags: <defaults>
</compile_context>

<pallas_src>
import functools

import jax
import jax.numpy as jnp
import numpy as np
from jax.experimental import pallas as pl
from jax.experimental.pallas import tpu as pltpu


_VMEM_LIMIT_BYTES = 32 * 1024 * 1024      # explicit scoped-VMEM limit (safe on v5e/v6e/v7x)
_INPUT_BUFFER_BUDGET = 8 * 1024 * 1024    # per pipeline buffer; x2 for double buffering


def _choose_block_rows(T, C, itemsize, max_rows):
    """Largest T-tile whose double-buffered input stays under the VMEM budget."""
    tm = _INPUT_BUFFER_BUDGET // max(1, C * itemsize)
    tm = int(min(tm, T, max_rows))
    if tm >= T:
        return T                              # single block == full array (always legal)
    tm = max(16, (tm // 16) * 16)             # sublane-aligned for f32 (8) and bf16 (16)
    return min(tm, T)


def _argmax_kernel(emission_ref, idx_ref):
    """Per-row argmax over the class axis (lanes), first-occurrence tie-break."""
    e = emission_ref[...]                                     # (TM, C)
    C = e.shape[-1]
    col = jax.lax.broadcasted_iota(jnp.int32, e.shape, 1)     # class index per lane

    if e.dtype == jnp.bfloat16 and C <= 65536:
        # Fused packed-key argmax: one cross-lane reduction instead of two.
        # Map the bf16 bit pattern to a monotone 16-bit integer key, pack it with
        # the bit-complemented lane index into a single int32, and take jnp.max.
        raw = pltpu.bitcast(e, jnp.int16).astype(jnp.int32) & 0xFFFF   # zero-extended bits
        mono = jnp.where(raw >= 0x8000, 0xFFFF - raw, raw + 0x8000)    # monotone in value
        key = (mono - 0x8000) * 65536 + (0xFFFF - col)                 # ties -> smallest col
        best = jnp.max(key, axis=-1, keepdims=True)                    # single XLU reduce
        idx = 0xFFFF - (best & 0xFFFF)
    else:
        # Exact path (matches torch.argmax / np.argmax bit-for-bit).
        x = e.astype(jnp.float32)
        mx = jnp.max(x, axis=-1, keepdims=True)
        idx = jnp.min(jnp.where(x == mx, col, C), axis=-1, keepdims=True)

    idx_ref[...] = idx.astype(jnp.int32)


@functools.partial(jax.jit, static_argnames=("blank", "max_rows"))
def _greedy_ctc_device(emission, *, blank, max_rows):
    """Device pipeline: Pallas argmax -> keep mask -> compaction. Returns (compact, count)."""
    T, C = emission.shape
    tm = _choose_block_rows(T, C, emission.dtype.itemsize, max_rows)

    idx = pl.pallas_call(
        _argmax_kernel,
        grid=(pl.cdiv(T, tm),),
        in_specs=[pl.BlockSpec((tm, C), lambda i: (i, 0))],
        out_specs=pl.BlockSpec((tm, 1), lambda i: (i, 0)),
        out_shape=jax.ShapeDtypeStruct((T, 1), jnp.int32),
        compiler_params=pltpu.CompilerParams(
            dimension_semantics=("parallel",),     # blocks are independent -> megacore-shardable
            vmem_limit_bytes=_VMEM_LIMIT_BYTES,
        ),
    )(emission)[:, 0]                                          # (T,) int32

    # unique_consecutive + blank removal on the (T,) vector (cheap, no cross-block
    # dependency inside the kernel).
    pos = jnp.arange(T)
    prev = jnp.roll(idx, 1)
    keep = (idx != blank) & ((pos == 0) | (idx != prev))

    # On-device compaction: only compacted indices + a count go to the host.
    count = jnp.sum(keep.astype(jnp.int32))
    kept_pos = jnp.nonzero(keep, size=T, fill_value=0)[0]
    compact = idx[kept_pos]
    return compact, count


class GreedyCTCDecoder:
    """JAX/Pallas equivalent of the PyTorch GreedyCTCDecoder module."""

    def __init__(self, labels, blank=0, max_block_rows=8192):
        self.labels = labels
        self.blank = blank
        self.max_block_rows = max_block_rows

    def __call__(self, emission: jax.Array) -> str:
        compact, count = _greedy_ctc_device(
            emission, blank=self.blank, max_rows=self.max_block_rows)
        compact, count = jax.device_get((compact, count))      # single blocking transfer
        # TODO(synk): python-string join stays on host; no Pallas equivalent for strings.
        return ''.join(self.labels[int(i)] for i in compact[: int(count)])


def _reference_decode_from_indices(indices, labels, blank=0):
    """Pure-python reference mimicking the PyTorch forward, given argmax indices."""
    dedup = []
    for i in np.asarray(indices).tolist():
        if not dedup or i != dedup[-1]:
            dedup.append(int(i))
    return ''.join(labels[i] for i in dedup if i != blank)


if __name__ == "__main__":
    key = jax.random.PRNGKey(0)
    k1, k2 = jax.random.split(key)

    # --- Test 1: small single-block f32 path (exact vs numpy reference) ---
    T, C = 16, 32
    labels = "-abcdefghijklmnopqrstuvwxyz01234"
    assert len(labels) == C
    emission = jax.random.normal(k1, (T, C), dtype=jnp.float32)

    decoder = GreedyCTCDecoder(labels, blank=0)
    # Run the kernel pipeline once and block on the device result.
    dev_out = _greedy_ctc_device(emission, blank=0, max_rows=decoder.max_block_rows)
    jax.block_until_ready(dev_out)

    out = decoder(emission)
    ref = _reference_decode_from_indices(np.argmax(np.asarray(emission), axis=-1), labels, 0)
    assert out == ref, f"f32 single-block mismatch: kernel={out!r} ref={ref!r}"

    # --- Test 2: multi-block tiled path (grid=3, ragged last block), f32 and bf16 ---
    T2, C2 = 300, 128
    labels2 = ['-'] + [chr(ord('a') + (i % 26)) for i in range(1, C2)]
    emission2 = jax.random.normal(k2, (T2, C2), dtype=jnp.float32)
    decoder2 = GreedyCTCDecoder(labels2, blank=0, max_block_rows=128)   # force tiling over T

    out2 = decoder2(emission2)
    ref2 = _reference_decode_from_indices(np.argmax(np.asarray(emission2), axis=-1), labels2, 0)
    assert out2 == ref2, f"f32 tiled mismatch: kernel={out2!r} ref={ref2!r}"

    # bf16 input exercises the fused packed-key single-reduction argmax; reference
    # is plain XLA argmax on the same bf16 data (first-occurrence tie-break).
    emission2_bf16 = emission2.astype(jnp.bfloat16)
    out2_bf16 = decoder2(emission2_bf16)
    ref2_idx = np.asarray(jnp.argmax(emission2_bf16, axis=-1))
    ref2_bf16 = _reference_decode_from_indices(ref2_idx, labels2, 0)
    assert out2_bf16 == ref2_bf16, (
        f"bf16 tiled mismatch: kernel={out2_bf16!r} ref={ref2_bf16!r}")

    print("KERNEL_OK")
</pallas_src>

<mosaic_0001>
module attributes {stable_mosaic.version = 11 : i64} {
  func.func private @main(%arg0: i32) attributes {dimension_semantics = [#tpu.dimension_semantics<core_parallel>], iteration_bounds = array<i64: 2>, tpu.core_type = #tpu.core_type<sc_scalar_subcore>, window_params = []} {
    return
  }
}

module attributes {stable_mosaic.version = 11 : i64} {
  func.func private @main(%arg0: i32) attributes {dimension_semantics = [#tpu.dimension_semantics<core_parallel>], iteration_bounds = array<i64: 2>, tpu.core_type = #tpu.core_type<sc_scalar_subcore>, window_params = []} {
    return
  }
}

module attributes {stable_mosaic.version = 11 : i64} {
  func.func @_argmax_kernel(%arg0: i32, %arg1: memref<16x32xf32, #tpu.memory_space<vmem>>, %arg2: memref<16x1xi32, #tpu.memory_space<vmem>>) attributes {dimension_semantics = [#tpu.dimension_semantics<parallel>], iteration_bounds = array<i64: 1>, scalar_prefetch = 0 : i64, scratch_operands = 0 : i64, tpu.core_type = #tpu.core_type<tc>, window_params = [{transform_indices = @transform_0, window_bounds = array<i64: 16, 32>}, {transform_indices = @transform_1, window_bounds = array<i64: 16, 1>}]} {
    %c0 = arith.constant 0 : index
    %c0_0 = arith.constant 0 : index
    %0 = vector.load %arg1[%c0, %c0_0] : memref<16x32xf32, #tpu.memory_space<vmem>>, vector<16x32xf32>
    %1 = tpu.iota {dimensions = array<i32: 1>} : vector<16x32xi32>
    %cst = arith.constant dense<0xFF800000> : vector<16xf32>
    %2 = vector.multi_reduction <maximumf>, %0, %cst [1] : vector<16x32xf32> to vector<16xf32>
    %3 = vector.shape_cast %2 : vector<16xf32> to vector<16x1xf32>
    %4 = vector.broadcast %3 : vector<16x1xf32> to vector<16x32xf32>
    %5 = arith.cmpf oeq, %0, %4 : vector<16x32xf32>
    %c32_i32 = arith.constant 32 : i32
    %6 = vector.broadcast %c32_i32 : i32 to vector<16x32xi32>
    %7 = arith.select %5, %1, %6 : vector<16x32xi1>, vector<16x32xi32>
    %cst_1 = arith.constant dense<2147483647> : vector<16xi32>
    %8 = vector.multi_reduction <minsi>, %7, %cst_1 [1] : vector<16x32xi32> to vector<16xi32>
    %9 = vector.shape_cast %8 : vector<16xi32> to vector<16x1xi32>
    %c0_2 = arith.constant 0 : index
    %c0_3 = arith.constant 0 : index
    %10 = vector.load %arg2[%c0_2, %c0_3] : memref<16x1xi32, #tpu.memory_space<vmem>>, vector<16x1xi32>
    tpu.vector_store %arg2[%c0_2, %c0_3], %9 {strides = array<i32>} : memref<16x1xi32, #tpu.memory_space<vmem>>, vector<16x1xi32>,
    return
  }
  func.func @transform_0(%arg0: i32) -> (i32, i32) {
    %c0_i32 = arith.constant 0 : i32
    %c0_i32_0 = arith.constant 0 : i32
    return %arg0, %c0_i32 : i32, i32
  }
  func.func @transform_1(%arg0: i32) -> (i32, i32) {
    %c0_i32 = arith.constant 0 : i32
    %c0_i32_0 = arith.constant 0 : i32
    return %arg0, %c0_i32 : i32, i32
  }
}

</mosaic_0001>

<bundles_post_ra>
// kernel: _greedy_ctc_device.1
= control target key start
LH: loop header
LB: loop body
LE: loop exit
PB: predicated region body
PF: predicated region fallthrough
CT: control target
= control target key end

     0   :  { %6 = vsyncpa [#allocation3], 0  ;;  %s100_s6 = smov [#allocation2]   ;;  %s126_s0 = inlined_call_operand.hbm [shape: f32[16,32], index: 0, kind: input, shape index: {}]   ;;  %s127_s1 = inlined_call_operand.vmem [shape: s32[16,1], index: 1, kind: output, shape index: {}]  }
   0x1   :  { %s12_s7 = sshll.u32 %s100_s6, 4  ;;  %s13_s7 = int_to_ptr.vmem [resolvable:$true] %s12_s7 }
   0x2   :  { %s86_s8 = scalar_lea.vmem %s13_s7, 256  ;;  %p91_p1 = scmp.lt.s32.totalorder %s13_s7, %s13_s7 }
   0x3   :  { %p87_p0 = scmp.ne.s32.totalorder %s13_s7, %s86_s8  ;;  %p92_p2 = scmp.lt.s32.totalorder %s86_s8, %s86_s8 }
   0x5   :  { %p93_p3 = por %p92_p2, %p91_p1 }
   0x7   :  { %p94_p4 = pnand %p93_p3, %p87_p0 }
   0x9   :  { %97 = shalt.err (!%p94_p4)
}
   0xa   :  { %s101_s9 = smov 128   ;;  %s102_s10 = smov 8  }
   0xb   :  { %18 = dma.hbm_to_vmem [thread:$0]  %s126_s0, 256, %s13_s7, [#allocation3], %s101_s9, %s101_s9, %s102_s10  }
   0xc   :  { %98 = dma.done.wait [#allocation3], 256  }
   0xd   :  { %99 = vsyncadd [#allocation3], 4294967040  ;;  %vm26_vm0 = vcmask 261120   ;;  %v22_v0 = vld [vmem:[#allocation2] sm:$0xff]  ;;  %v23_v1 = vld [vmem:[#allocation2 + $0x8] sm:$0xff]  ;;  %v24_v4 = vlaneseq  ;;  %vm67_vm5 = vcmask 7168  }
   0xe   :  { %v27_v2 = vsel %vm26_vm0, %v22_v0, -inf  ;;  %v30_v3 = vsel %vm26_vm0, %v23_v1, -inf }
   0xf   :  { %28 = vmax.xlane.f32.xlu0 %v27_v2  ;;  %v25_v5 = vand.u32 127, %v24_v4 }
  0x13   :  { %31 = vmax.xlane.f32.xlu0 %v30_v3 }
  0x98   :  { %v29_v6 = vpop.xlane.xlu0 %28 }
  0x99   :  { %vm33_vm1 = vcmp.eq.f32.partialorder %v22_v0, %v29_v6 }
  0x9a   :  { %v35_v7 = vsel %vm33_vm1, %v25_v5, 32 }
  0x9b   :  { %v37_v8 = vsel %vm26_vm0, %v35_v7, 2147483647 }
  0x9c   :  { %v32_v9 = vpop.xlane.xlu0 %31  ;;  %v39_v10 = vshra.s32 %v37_v8, 16  ;;  %v38_v16 = vand.u32 65535, %v37_v8 }
  0x9d   :  { %vm34_vm2 = vcmp.eq.f32.partialorder %v23_v1, %v32_v9 }
  0x9e   :  { %v36_v11 = vsel %vm34_vm2, %v25_v5, 32  ;;  %v41_v12 = vcvt.s32.f32 %v39_v10  ;;  %v40_v18 = vcvt.s32.f32 %v38_v16 }
  0x9f   :  { %v52_v13 = vsel %vm26_vm0, %v36_v11, 2147483647 }
  0xa0   :  { %42 = vmin.xlane.f32.xlu1 %v41_v12  ;;  %v54_v14 = vshra.s32 %v52_v13, 16  ;;  %v53_v19 = vand.u32 65535, %v52_v13 }
  0xa2   :  { %v56_v15 = vcvt.s32.f32 %v54_v14  ;;  %v55_v22 = vcvt.s32.f32 %v53_v19 }
  0xa4   :  { %57 = vmin.xlane.f32.xlu1 %v56_v15 }
 0x129   :  { %v43_v17 = vpop.xlane.xlu1 %42 }
 0x12a   :  { %vm44_vm3 = vcmp.eq.f32.partialorder %v41_v12, %v43_v17  ;;  %v49_v24 = vcvt.f32.s32 %v43_v17 }
 0x12b   :  { %v45_v20 = vsel %vm44_vm3, %v40_v18, inf }
 0x12c   :  { %46 = vmin.xlane.f32.xlu0 %v45_v20  ;;  %v50_v26 = vshll.u32 %v49_v24, 16 }
 0x12d   :  { %v58_v21 = vpop.xlane.xlu1 %57 }
 0x12e   :  { %vm59_vm4 = vcmp.eq.f32.partialorder %v56_v15, %v58_v21  ;;  %v64_v27 = vcvt.f32.s32 %v58_v21 }
 0x12f   :  { %v60_v23 = vsel %vm59_vm4, %v55_v22, inf }
 0x130   :  { %61 = vmin.xlane.f32.xlu1 %v60_v23  ;;  %v65_v31 = vshll.u32 %v64_v27, 16 }
 0x1b5   :  { %v47_v25 = vpop.xlane.xlu0 %46 }
 0x1b6   :  { %v48_v28 = vcvt.f32.s32 %v47_v25 }
 0x1b8   :  { %v51_v29 = vadd.s32 %v50_v26, %v48_v28 }
 0x1b9   :  { %v62_v30 = vpop.xlane.xlu1 %61 }
 0x1ba   :  { %68 = vst.msk [vmem:[%s127_s1] sm:$0xff] %vm67_vm5, %v51_v29  ;;  %v63_v32 = vcvt.f32.s32 %v62_v30 }
 0x1bc   :  { %v66_v33 = vadd.s32 %v65_v31, %v63_v32 }
 0x1be   :  { %69 = vst.msk [vmem:[%s127_s1 + $0x8] sm:$0xff] %vm67_vm5, %v66_v33 }
 0x1bf   :  { %74 = vsyncpa [#allocation3], 1 }

</bundles_post_ra>
